<compile_context>
chip_gen: v7x
topology: tpu7x:2x2x1
jax: 0.10.0
libtpu: 0.0.40
codegen_flags: <defaults>
</compile_context>

<pallas_src>
import jax
import jax.numpy as jnp
from jax.experimental import pallas as pl
from jax.experimental.pallas import tpu as pltpu


def _tl_encoder_kernel(x_ref, w_ref, b_ref, o_ref):
    # x_ref: (tb, D_in) f32, w_ref: (D_in, D_out) bf16, b_ref: (1, D_out) f32.
    x_bf = x_ref[...].astype(jnp.bfloat16)                 # in-kernel cast (VPU, hidden under DMA)
    acc = jnp.dot(x_bf, w_ref[...],
                  preferred_element_type=jnp.float32)      # MXU, f32 accumulate
    acc = acc + b_ref[...]                                 # f32 bias add
    o_ref[...] = jnp.maximum(acc, 0.0).astype(o_ref.dtype)  # ReLU, lane-dense store


def prepare_traffic_light_params(w, b):
    """One-time parameter prep: W in bf16 (native MXU dtype), bias as (1, D_out) f32."""
    return w.astype(jnp.bfloat16), b.reshape(1, -1).astype(jnp.float32)


def _batch_tile(B, block_b, split_threshold):
    """Pick the batch tile size (rows per grid step)."""
    if B <= split_threshold:
        return B  # single grid step — tiny calls are launch-bound anyway
    # >= 2 grid steps so both v7x TensorCores get work via the "parallel" axis,
    # capped at block_b so v5e/v6e still amortize per-step overhead with large
    # tiles.  Multiple of 16 (bf16 sublane pack; also satisfies the 8-row rule).
    half = -(-B // 2)                                   # cdiv(B, 2)
    tb = min(block_b, ((half + 15) // 16) * 16)
    return max(16, tb)


def traffic_light_encoder(x, w, b, *, block_b=1024, split_threshold=256,
                          out_dtype=jnp.float32):
    """ReLU(x @ w + b).

    x: (B, D_in) f32; w: (D_in, D_out) f32 or bf16; b: (D_out,) or (1, D_out).
    Matmul runs in bf16 on the MXU with f32 accumulation; bias/ReLU in f32.
    """
    B, D_in = x.shape
    D_out = w.shape[1]

    # Idempotent param prep (no-op if prepare_traffic_light_params was used).
    wb = w.astype(jnp.bfloat16)
    b2 = b.reshape(1, D_out).astype(jnp.float32)

    tb = _batch_tile(B, block_b, split_threshold)
    grid = (pl.cdiv(B, tb),)                            # trailing partial block is masked

    cost = pl.CostEstimate(
        flops=2 * B * D_in * D_out,
        transcendentals=0,
        bytes_accessed=(B * D_in * 4                    # x (f32)
                        + D_in * D_out * 2              # W (bf16), resident
                        + D_out * 4                     # bias
                        + B * D_out * jnp.dtype(out_dtype).itemsize),  # output
    )

    out = pl.pallas_call(
        _tl_encoder_kernel,
        out_shape=jax.ShapeDtypeStruct((B, D_out), out_dtype),
        grid=grid,
        in_specs=[
            pl.BlockSpec((tb, D_in), lambda i: (i, 0)),      # x: tiled over batch, f32 DMA
            pl.BlockSpec((D_in, D_out), lambda i: (0, 0)),   # W: VMEM-resident, one DMA
            pl.BlockSpec((1, D_out), lambda i: (0, 0)),      # b: VMEM-resident, one DMA
        ],
        out_specs=pl.BlockSpec((tb, D_out), lambda i: (i, 0)),
        compiler_params=pltpu.CompilerParams(
            dimension_semantics=("parallel",),               # megacore sharding on v7x
        ),
        cost_estimate=cost,
    )(x, wb, b2)

    return out


def _ref_bf16(x, w, b):
    # Reference with the same bf16-inputs / f32-accumulate numerics.
    return jnp.maximum(
        jnp.dot(x.astype(jnp.bfloat16), w.astype(jnp.bfloat16),
                preferred_element_type=jnp.float32) + b.reshape(1, -1), 0.0)


if __name__ == "__main__":
    image_state_size = 256
    latent_size = 128

    key = jax.random.PRNGKey(0)
    kx, kw, kb, kx2 = jax.random.split(key, 4)

    # Deterministic synthetic parameters (weights_init in the original module
    # is just an initializer — no checkpoint load here).
    w = jax.random.normal(kw, (image_state_size, latent_size), dtype=jnp.float32) * 0.02
    b = jax.random.normal(kb, (latent_size,), dtype=jnp.float32) * 0.02
    wb, b2 = prepare_traffic_light_params(w, b)           # one-time bf16 cast of W

    # Case 1: typical tiny per-call batch -> single grid step, no over-tiling.
    x_small = jax.random.normal(kx, (8, image_state_size), dtype=jnp.float32)
    out_small = jax.block_until_ready(traffic_light_encoder(x_small, wb, b2))
    assert out_small.shape == (8, latent_size)
    assert jnp.allclose(out_small, _ref_bf16(x_small, w, b), atol=1e-3, rtol=1e-3)
    # Loose check against the pure-f32 reference (bf16 matmul rounding only).
    assert jnp.allclose(out_small, jnp.maximum(x_small @ w + b, 0.0),
                        atol=3e-2, rtol=3e-2)

    # Case 2: aggregated batch with a non-tile-multiple size (B=600 -> tb=304,
    # grid=(2,), masked partial trailing block).  W/b stay VMEM-resident across
    # tiles; both v7x TensorCores get one tile each.
    x_big = jax.random.normal(kx2, (600, image_state_size), dtype=jnp.float32)
    out_big = jax.block_until_ready(traffic_light_encoder(x_big, wb, b2))
    assert out_big.shape == (600, latent_size)
    assert jnp.allclose(out_big, _ref_bf16(x_big, w, b), atol=1e-3, rtol=1e-3)
    assert jnp.allclose(out_big, jnp.maximum(x_big @ w + b, 0.0),
                        atol=3e-2, rtol=3e-2)

    # Case 3: optional bf16-output path for a bf16-consuming downstream MLP.
    out_bf16 = jax.block_until_ready(
        traffic_light_encoder(x_big, wb, b2, out_dtype=jnp.bfloat16))
    assert out_bf16.dtype == jnp.bfloat16
    assert jnp.allclose(out_bf16.astype(jnp.float32), _ref_bf16(x_big, w, b),
                        atol=1e-2, rtol=1e-2)

    print("KERNEL_OK")
</pallas_src>

<mosaic_0001>
module attributes {stable_mosaic.version = 11 : i64} {
  func.func @_tl_encoder_kernel(%arg0: i32, %arg1: memref<8x256xf32, #tpu.memory_space<vmem>>, %arg2: memref<256x128xbf16, #tpu.memory_space<vmem>>, %arg3: memref<1x128xf32, #tpu.memory_space<vmem>>, %arg4: memref<8x128xf32, #tpu.memory_space<vmem>>) attributes {dimension_semantics = [#tpu.dimension_semantics<parallel>], iteration_bounds = array<i64: 1>, scalar_prefetch = 0 : i64, scratch_operands = 0 : i64, tpu.core_type = #tpu.core_type<tc>, window_params = [{transform_indices = @transform_0, window_bounds = array<i64: 8, 256>}, {pipeline_mode = #tpu.pipeline_mode<synchronous>, transform_indices = @transform_1, window_bounds = array<i64: 256, 128>}, {pipeline_mode = #tpu.pipeline_mode<synchronous>, transform_indices = @transform_2, window_bounds = array<i64: 1, 128>}, {transform_indices = @transform_3, window_bounds = array<i64: 8, 128>}]} {
    %c0 = arith.constant 0 : index
    %c0_0 = arith.constant 0 : index
    %0 = vector.load %arg1[%c0, %c0_0] : memref<8x256xf32, #tpu.memory_space<vmem>>, vector<8x256xf32>
    %1 = arith.truncf %0 : vector<8x256xf32> to vector<8x256xbf16>
    %c0_1 = arith.constant 0 : index
    %c0_2 = arith.constant 0 : index
    %2 = vector.load %arg2[%c0_1, %c0_2] : memref<256x128xbf16, #tpu.memory_space<vmem>>, vector<256x128xbf16>
    %cst = arith.constant dense<0.000000e+00> : vector<8x128xf32>
    %3 = tpu.matmul %1, %2, %cst {dimension_numbers = #tpu.dot_dimension_numbers<[1], [0], [0], [1], [0, 0, 1, 1], [], []>} : vector<8x256xbf16>, vector<256x128xbf16>, vector<8x128xf32> -> vector<8x128xf32>
    %c0_3 = arith.constant 0 : index
    %c0_4 = arith.constant 0 : index
    %4 = vector.load %arg3[%c0_3, %c0_4] : memref<1x128xf32, #tpu.memory_space<vmem>>, vector<1x128xf32>
    %5 = vector.broadcast %4 : vector<1x128xf32> to vector<8x128xf32>
    %6 = arith.addf %3, %5 : vector<8x128xf32>
    %cst_5 = arith.constant 0.000000e+00 : f32
    %7 = vector.broadcast %cst_5 : f32 to vector<8x128xf32>
    %8 = arith.maximumf %6, %7 : vector<8x128xf32>
    %c0_6 = arith.constant 0 : index
    %c0_7 = arith.constant 0 : index
    %9 = vector.load %arg4[%c0_6, %c0_7] : memref<8x128xf32, #tpu.memory_space<vmem>>, vector<8x128xf32>
    tpu.vector_store %arg4[%c0_6, %c0_7], %8 {strides = array<i32>} : memref<8x128xf32, #tpu.memory_space<vmem>>, vector<8x128xf32>,
    return
  }
  func.func @transform_0(%arg0: i32) -> (i32, i32) {
    %c0_i32 = arith.constant 0 : i32
    %c0_i32_0 = arith.constant 0 : i32
    return %arg0, %c0_i32 : i32, i32
  }
  func.func @transform_1(%arg0: i32) -> (i32, i32) {
    %c0_i32 = arith.constant 0 : i32
    %c0_i32_0 = arith.constant 0 : i32
    %c0_i32_1 = arith.constant 0 : i32
    return %c0_i32, %c0_i32_0 : i32, i32
  }
  func.func @transform_2(%arg0: i32) -> (i32, i32) {
    %c0_i32 = arith.constant 0 : i32
    %c0_i32_0 = arith.constant 0 : i32
    %c0_i32_1 = arith.constant 0 : i32
    return %c0_i32, %c0_i32_0 : i32, i32
  }
  func.func @transform_3(%arg0: i32) -> (i32, i32) {
    %c0_i32 = arith.constant 0 : i32
    %c0_i32_0 = arith.constant 0 : i32
    return %arg0, %c0_i32 : i32, i32
  }
}

</mosaic_0001>

<bundles_post_ra>
// kernel: tpu_custom_call.1
= control target key start
LH: loop header
LB: loop body
LE: loop exit
PB: predicated region body
PF: predicated region fallthrough
CT: control target
= control target key end

     0   :  { %8 = vsyncpa [#allocation3], 0  ;;  %s442_s0 = inlined_call_operand.hbm [shape: f32[8,256], index: 0, kind: input, shape index: {}]   ;;  %s443_s1 = inlined_call_operand.hbm [shape: bf16[256,128], index: 1, kind: input, shape index: {}]   ;;  %s444_s2 = inlined_call_operand.vmem [shape: f32[1,128], index: 2, kind: input, shape index: {}]   ;;  %s445_s3 = inlined_call_operand.hbm [shape: f32[8,128], index: 3, kind: output, shape index: {}]  }
   0x1   :  { %9 = vsyncpa [#allocation6], 0 }
   0x2   :  { %10 = vsyncpa [#allocation4], 0  ;;  %s371_s12 = smov [#allocation2]   ;;  %s372_s14 = smov [#allocation5]  }
   0x3   :  { %s17_s13 = sshll.u32 %s371_s12, 4  ;;  %s26_s15 = sshll.u32 %s372_s14, 4  ;;  %s18_s13 = int_to_ptr.vmem [resolvable:$true] %s17_s13  ;;  %s396_s15 = int_to_ptr.vmem [resolvable:$true] %s26_s15 }
   0x4   :  { %s299_s18 = scalar_lea.hbm %s442_s0, 256 }
   0x5   :  { %p300_p0 = scmp.ne.s32.totalorder %s442_s0, %s299_s18  ;;  %p303_p1 = scmp.lt.u32.totalorder %s299_s18, %s442_s0 }
   0x7   :  { %p305_p2 = pnand %p303_p1, %p300_p0 }
   0x9   :  { %308 = shalt.err (!%p305_p2)
}
   0xa   :  { %s309_s23 = scalar_lea.vmem %s18_s13, 256  ;;  %p314_p4 = scmp.lt.s32.totalorder %s18_s13, %s18_s13 }
   0xb   :  { %p310_p3 = scmp.ne.s32.totalorder %s18_s13, %s309_s23  ;;  %p315_p5 = scmp.lt.s32.totalorder %s309_s23, %s309_s23 }
   0xd   :  { %p316_p6 = por %p315_p5, %p314_p4 }
   0xf   :  { %p317_p7 = pnand %p316_p6, %p310_p3 }
  0x11   :  { %320 = shalt.err (!%p317_p7)
}
  0x12   :  { %20 = dma.hbm_to_vmem [thread:$0]  %s442_s0, 256, %s18_s13, [#allocation3]  }
  0x13   :  { %s321_s28 = scalar_lea.hbm %s443_s1, 2048 }
  0x14   :  { %p322_p8 = scmp.ne.s32.totalorder %s443_s1, %s321_s28  ;;  %p325_p9 = scmp.lt.u32.totalorder %s321_s28, %s443_s1 }
  0x16   :  { %p327_p10 = pnand %p325_p9, %p322_p8 }
  0x18   :  { %330 = shalt.err (!%p327_p10)
}
  0x19   :  { %s331_s6 = scalar_lea.vmem %s396_s15, 2048  ;;  %p336_p12 = scmp.lt.s32.totalorder %s396_s15, %s396_s15 }
  0x1a   :  { %p332_p11 = scmp.ne.s32.totalorder %s396_s15, %s331_s6  ;;  %p337_p13 = scmp.lt.s32.totalorder %s331_s6, %s331_s6 }
  0x1c   :  { %p338_p0 = por %p337_p13, %p336_p12 }
  0x1e   :  { %p339_p1 = pnand %p338_p0, %p332_p11 }
  0x20   :  { %342 = shalt.err (!%p339_p1)
}
  0x21   :  { %s373_s0 = smov 64   ;;  %s374_s7 = smov 4  }
  0x22   :  { %32 = dma.hbm_to_vmem [thread:$0]  %s443_s1, 2048, %s396_s15, [#allocation6], %s373_s0, %s373_s0, %s374_s7  }
  0x23   :  { %365 = dma.done.wait [#allocation3], 256  }
  0x24   :  { %366 = vsyncadd [#allocation3], 4294967040 }
  0x25   :  { %367 = dma.done.wait [#allocation6], 2048  }
  0x26   :  { %368 = vsyncadd [#allocation6], 4294965248  ;;  %v283_v0 = vld [vmem:[#allocation5 + $0x40] sm:$0xff]   ;;  %v285_v2 = vld [vmem:[#allocation5 + $0x48] sm:$0xff]   ;;  %s375_s11 = smov [#allocation7]  }
  0x27   :  { %v284_v1 = vld [vmem:[#allocation5] sm:$0xff]   ;;  %256 = vmatprep.subr.bf16.mxu0 %v283_v0  ;;  %v286_v3 = vld [vmem:[#allocation5 + $0x8] sm:$0xff]   ;;  %v287_v4 = vld [vmem:[#allocation5 + $0x50] sm:$0xff]   ;;  %s229_s12 = sshll.u32 %s375_s11, 4  ;;  %s230_s12 = int_to_ptr.vmem [resolvable:$true] %s229_s12 }
  0x28   :  { %257 = vmatpush3.bf16.msra.mxu0 %v284_v1  ;;  %v288_v5 = vld [vmem:[#allocation5 + $0x10] sm:$0xff]   ;;  %v289_v6 = vld [vmem:[#allocation5 + $0x58] sm:$0xff]   ;;  %v291_v8 = vld [vmem:[#allocation5 + $0x60] sm:$0xff]   ;;  %s343_s13 = scalar_lea.vmem %s230_s12, 128  ;;  %p348_p3 = scmp.lt.s32.totalorder %s230_s12, %s230_s12 }
  0x29   :  { %258 = vmatprep.subr.bf16.mxu0 %v285_v2  ;;  %v290_v7 = vld [vmem:[#allocation5 + $0x18] sm:$0xff]   ;;  %v292_v9 = vld [vmem:[#allocation5 + $0x20] sm:$0xff]   ;;  %v293_v10 = vld [vmem:[#allocation5 + $0x68] sm:$0xff]   ;;  %p344_p2 = scmp.ne.s32.totalorder %s230_s12, %s343_s13  ;;  %p349_p4 = scmp.lt.s32.totalorder %s343_s13, %s343_s13 }
  0x2a   :  { %v43_v11 = vld [vmem:[#allocation2 + $0x8] sm:$0xff]  ;;  %v294_v13 = vld [vmem:[#allocation5 + $0x28] sm:$0xff]   ;;  %v295_v14 = vld [vmem:[#allocation5 + $0x70] sm:$0xff]  }
  0x2b   :  { %v45_v12 = vpack.c.bf16 %v43_v11, %v43_v11  ;;  %v296_v15 = vld [vmem:[#allocation5 + $0x30] sm:$0xff]   ;;  %v297_v16 = vld [vmem:[#allocation5 + $0x78] sm:$0xff]   ;;  %p350_p5 = por %p349_p4, %p348_p3 }
  0x2c   :  { %259 = vmatpush3.bf16.msra.mxu0 %v286_v3  ;;  %v298_v17 = vld [vmem:[#allocation5 + $0x38] sm:$0xff]   ;;  %v42_v18 = vld [vmem:[#allocation2] sm:$0xff] }
  0x2d   :  { %260 = vmatprep.subr.bf16.mxu0 %v287_v4  ;;  %213 = vmatprep.mubr.bf16.mxu0 %v45_v12  ;;  %v44_v19 = vpack.c.bf16 %v42_v18, %v42_v18  ;;  %v239_v21 = vld [vmem:[%s444_s2] ss:$0 sm:$0xff]  ;;  %p351_p6 = pnand %p350_p5, %p344_p2 }
  0x30   :  { %261 = vmatpush3.bf16.msra.mxu0 %v288_v5 }
  0x31   :  { %262 = vmatprep.subr.bf16.mxu0 %v289_v6 }
  0x34   :  { %263 = vmatpush3.bf16.msra.mxu0 %v290_v7 }
  0x35   :  { %264 = vmatprep.subr.bf16.mxu0 %v291_v8 }
  0x38   :  { %265 = vmatpush3.bf16.msra.mxu0 %v292_v9 }
  0x39   :  { %266 = vmatprep.subr.bf16.mxu0 %v293_v10 }
  0x3c   :  { %267 = vmatpush3.bf16.msra.mxu0 %v294_v13 }
  0x3d   :  { %268 = vmatprep.subr.bf16.mxu0 %v295_v14 }
  0x40   :  { %269 = vmatpush3.bf16.msra.mxu0 %v296_v15 }
  0x41   :  { %270 = vmatprep.subr.bf16.mxu0 %v297_v16 }
  0x44   :  { %271 = vmatpush3.bf16.msra.mxu0 %v298_v17 }
  0x47   :  { %214 = vmatmul.mubr.bf16.vlgmr.msra.gmra.mrb[0].mxu0 %v44_v19 }
 0x11a   :  { %v272_v20 = vpop.f32.mrb[0].mxu0 }
 0x11b   :  { %v273_v22 = vpop.f32.mrb[1].mxu0 }
 0x11c   :  { %v274_v23 = vadd.f32 %v273_v22, %v272_v20  ;;  %v275_v24 = vpop.f32.mrb[2].mxu0 }
 0x11d   :  { %v276_v25 = vpop.f32.mrb[3].mxu0 }
 0x11e   :  { %v216_v26 = vadd.f32 %v274_v23, %v239_v21 }
 0x120   :  { %v221_v27 = vmax.f32 %v216_v26, 0.0 }
 0x122   :  { %222 = vst [vmem:[#allocation7] sm:$0xff] %v221_v27 }
 0x123   :  { %354 = shalt.err (!%p351_p6)
}
 0x124   :  { %s355_s2 = scalar_lea.hbm %s445_s3, 128 }
 0x125   :  { %p356_p7 = scmp.ne.s32.totalorder %s445_s3, %s355_s2  ;;  %p359_p8 = scmp.lt.u32.totalorder %s355_s2, %s445_s3 }
 0x127   :  { %p361_p9 = pnand %p359_p8, %p356_p7 }
 0x129   :  { %364 = shalt.err (!%p361_p9)
}
 0x12a   :  { %232 = dma.vmem_to_hbm [thread:$0]  %s230_s12, 128, %s445_s3, [#allocation4]  }
 0x12b   :  { %369 = dma.done.wait [#allocation4], 128  }
 0x12c   :  { %370 = vsyncadd [#allocation4], 4294967168 }
 0x12d   :  { %236 = vsyncpa [#allocation3], 1 }
 0x12e   :  { %237 = vsyncpa [#allocation6], 1 }
 0x12f   :  { %238 = vsyncpa [#allocation4], 1 }

</bundles_post_ra>
